<compile_context>
chip_gen: v6e
topology: v6e:2x2x1
jax: 0.10.0
libtpu: 0.0.40
codegen_flags: <defaults>
</compile_context>

<pallas_src>
import jax
import jax.numpy as jnp
from jax.experimental import pallas as pl
from jax.experimental.pallas import tpu as pltpu


def _round_up(n, m):
    return ((n + m - 1) // m) * m


def _cdiv(a, b):
    return (a + b - 1) // b


def _tpu_vmem_capacity_bytes():
    try:
        return int(pltpu.get_tpu_info().vmem_capacity_bytes)
    except Exception:
        return 64 * 1024 * 1024  # conservative fallback (v7x capacity)


def _tensorcores_per_chip():
    try:
        kind = jax.devices()[0].device_kind.lower()
        if "v7" in kind:
            return 2
    except Exception:
        pass
    return 1


def shallow_rbf_kernel(x_ref, ct_ref, pk_ref, wt_ref, b_ref, o_ref):
    # x:  (TB, DP)   flattened input tile (streamed over the batch grid)
    # ct: (DP, CP)   -2 * centers^T, zero-padded (resident across the grid)
    # pk: (8, CP)    packed params: row0 = ||c||^2, row1 = beta,
    #                row2 = additive column mask (0 valid / -1e30 padded)
    # wt: (CP, NCP)  fc weight^T (zero-padded)
    # b:  (1, NCP)   fc bias (zero-padded)
    x = x_ref[...]
    pk = pk_ref[...]
    c2 = pk[0:1, :]
    beta = pk[1:2, :]
    col_mask = pk[2:3, :]

    # Squared distances via the MXU decomposition; the -2 is folded into ct.
    # Clamp tiny negatives from floating-point cancellation before sqrt.
    x2 = jnp.sum(x * x, axis=-1, keepdims=True)                        # (TB, 1)
    xc = jnp.dot(x, ct_ref[...], preferred_element_type=jnp.float32)   # -2 x.c
    d2 = jnp.maximum(x2 + c2 + xc, 0.0)
    dist = jnp.sqrt(d2)                                                # (TB, CP)

    # rbf activations; padded center columns get an additive -1e30 so their
    # exp is exactly 0 and they drop out of the row sum.
    e = jnp.exp(col_mask - beta * dist)                                # (TB, CP)
    rowsum = jnp.sum(e, axis=-1, keepdims=True)                        # (TB, 1)

    # fc on the unnormalized activations, then one (TB, NCP) rescale with an
    # EUP reciprocal (row normalization commutes with the linear layer).
    unnorm = jnp.dot(e, wt_ref[...], preferred_element_type=jnp.float32)
    o_ref[...] = unnorm * pl.reciprocal(rowsum, approx=False) + b_ref[...]


def prepare_rbf_params(centers, beta, fc_w, fc_b):
    """One-time (per parameter set) padding/packing of the RBF parameters.

    centers: (NCEN, D), beta: (NCEN,), fc_w: (NCLS, NCEN), fc_b: (NCLS,).
    """
    centers = jnp.asarray(centers, jnp.float32)
    beta = jnp.asarray(beta, jnp.float32)
    fc_w = jnp.asarray(fc_w, jnp.float32)
    fc_b = jnp.asarray(fc_b, jnp.float32)

    ncen, d = centers.shape
    ncls = fc_w.shape[0]
    DP = _round_up(d, 128)
    CP = _round_up(ncen, 128)
    NCP = _round_up(ncls, 128)

    # -2 folded into the resident centers buffer.
    ct_m2 = jnp.zeros((DP, CP), jnp.float32).at[:d, :ncen].set(-2.0 * centers.T)

    # ||c||^2, beta and the padded-column mask packed into one (8, CP) block.
    packed = jnp.zeros((8, CP), jnp.float32)
    packed = packed.at[0, :ncen].set(jnp.sum(centers * centers, axis=1))
    packed = packed.at[1, :ncen].set(beta)
    packed = packed.at[2, ncen:].set(-1e30)

    wt = jnp.zeros((CP, NCP), jnp.float32).at[:ncen, :ncls].set(fc_w.T)
    bias = jnp.zeros((1, NCP), jnp.float32).at[0, :ncls].set(fc_b)

    return {"ct_m2": ct_m2, "packed": packed, "wt": wt, "bias": bias,
            "d": d, "ncen": ncen, "ncls": ncls, "DP": DP, "CP": CP, "NCP": NCP}


def shallow_rbf_apply(x, params, *, batch_tile=512):
    """x: (B, C, H, W) or (B, D). Returns (B, num_classes) float32."""
    B = x.shape[0]
    d, DP, CP, NCP = params["d"], params["DP"], params["CP"], params["NCP"]
    ncls = params["ncls"]

    xf = x.reshape(B, -1).astype(jnp.float32)
    assert xf.shape[1] == d, (xf.shape, d)
    if d != DP:
        # Only the feature-dim remainder is padded; when d % 128 == 0 (the
        # common case, e.g. D = 1024) x streams through with NO extra HBM copy.
        xf = jnp.pad(xf, ((0, 0), (0, DP - d)))

    # ---- batch tiling -------------------------------------------------------
    n_tc = _tensorcores_per_chip()
    if B <= 8:
        TB = B  # single full-extent block (allowed: block dim == array dim)
    else:
        TB = max(8, _round_up(min(batch_tile, B), 8))
        if n_tc >= 2:
            # v7x: keep >= 2 grid steps so both TensorCores get work.
            TB = min(TB, _round_up(_cdiv(B, 2), 8))

    # ---- per-generation VMEM budget -----------------------------------------
    vmem_cap = _tpu_vmem_capacity_bytes()
    budget = int(0.45 * vmem_cap)

    def per_step_bytes(tb):
        # double-buffered x/out tiles + params (pipeline keeps 2 copies of the
        # constant-index blocks) + (tb, CP) f32 intermediates.
        return 4 * (2 * tb * DP + 2 * tb * NCP
                    + 2 * (DP * CP + 8 * CP + CP * NCP + NCP)
                    + 4 * tb * CP)

    while TB > 8 and per_step_bytes(TB) > budget:
        TB = max(8, _round_up(TB // 2, 8))
    # TODO(synk): if D*CP alone approaches the VMEM budget (very large
    # input_dim), add a D-tiled reduction grid axis accumulating x2/xc instead
    # of keeping the centers fully resident.

    vmem_need = per_step_bytes(TB)
    vmem_limit = int(min(max(vmem_need + (4 << 20), 16 << 20), 0.85 * vmem_cap))

    grid = (_cdiv(B, TB),)

    cost = pl.CostEstimate(
        flops=2 * B * DP * CP + 2 * B * CP * NCP,
        transcendentals=2 * B * CP,
        bytes_accessed=4 * (B * DP + DP * CP + B * NCP + CP * NCP + 8 * CP + NCP),
    )

    out = pl.pallas_call(
        shallow_rbf_kernel,
        out_shape=jax.ShapeDtypeStruct((B, NCP), jnp.float32),
        grid=grid,
        in_specs=[
            pl.BlockSpec((TB, DP), lambda i: (i, 0)),    # x: streamed over batch
            pl.BlockSpec((DP, CP), lambda i: (0, 0)),    # -2 * centers^T (resident)
            pl.BlockSpec((8, CP), lambda i: (0, 0)),     # [||c||^2; beta; mask]
            pl.BlockSpec((CP, NCP), lambda i: (0, 0)),   # fc weight^T
            pl.BlockSpec((1, NCP), lambda i: (0, 0)),    # fc bias
        ],
        out_specs=pl.BlockSpec((TB, NCP), lambda i: (i, 0)),
        compiler_params=pltpu.CompilerParams(
            dimension_semantics=("parallel",),
            vmem_limit_bytes=vmem_limit,
        ),
        cost_estimate=cost,
    )(xf, params["ct_m2"], params["packed"], params["wt"], params["bias"])
    return out[:, :ncls]


def shallow_rbf(x, centers, beta, fc_w, fc_b, *, batch_tile=512):
    """One-shot convenience wrapper (prefer prepare_rbf_params + apply)."""
    return shallow_rbf_apply(x, prepare_rbf_params(centers, beta, fc_w, fc_b),
                             batch_tile=batch_tile)


def shallow_rbf_reference(x, centers, beta, fc_w, fc_b):
    xf = x.reshape(x.shape[0], -1).astype(jnp.float32)
    dist = jnp.sqrt(
        jnp.sum((xf[:, None, :] - centers[None, :, :]) ** 2, axis=2)
    )
    act = jnp.exp(-beta[None, :] * dist)
    act = act / jnp.sum(act, axis=1, keepdims=True)
    return jnp.dot(act, fc_w.T, precision=jax.lax.Precision.HIGHEST) + fc_b[None, :]


if __name__ == "__main__":
    key = jax.random.PRNGKey(0)
    k_x, k_c, k_w, k_b = jax.random.split(key, 4)

    # Module hyper-params (small, consistent with the forward).
    B, C, H, W = 2, 4, 16, 16
    input_dim = C * H * W          # 1024
    num_centers = 32
    num_classes = 8

    # Deterministic synthetic parameters (shapes from __init__).
    x = 0.1 * jax.random.normal(k_x, (B, C, H, W), dtype=jnp.float32)
    centers = 0.1 * jax.random.normal(k_c, (num_centers, input_dim), dtype=jnp.float32)
    beta = jnp.ones((num_centers,), dtype=jnp.float32)
    bound = 1.0 / (num_centers ** 0.5)  # nn.Linear default init scale
    fc_w = jax.random.uniform(k_w, (num_classes, num_centers),
                              minval=-bound, maxval=bound, dtype=jnp.float32)
    fc_b = jax.random.uniform(k_b, (num_classes,),
                              minval=-bound, maxval=bound, dtype=jnp.float32)

    # Parameter preprocessing hoisted out of the per-call path (done once).
    prepared = prepare_rbf_params(centers, beta, fc_w, fc_b)
    fwd = jax.jit(lambda xb: shallow_rbf_apply(xb, prepared))

    out = jax.block_until_ready(fwd(x))

    ref = shallow_rbf_reference(x, centers, beta, fc_w, fc_b)
    assert out.shape == (B, num_classes)
    assert jnp.allclose(out, ref, rtol=1e-4, atol=1e-5), (out, ref)

    print("KERNEL_OK")
</pallas_src>

<mosaic_0001>
module attributes {stable_mosaic.version = 11 : i64} {
  func.func @shallow_rbf_kernel(%arg0: i32, %arg1: memref<2x1024xf32, #tpu.memory_space<vmem>>, %arg2: memref<1024x128xf32, #tpu.memory_space<vmem>>, %arg3: memref<8x128xf32, #tpu.memory_space<vmem>>, %arg4: memref<128x128xf32, #tpu.memory_space<vmem>>, %arg5: memref<1x128xf32, #tpu.memory_space<vmem>>, %arg6: memref<2x128xf32, #tpu.memory_space<vmem>>) attributes {dimension_semantics = [#tpu.dimension_semantics<parallel>], iteration_bounds = array<i64: 1>, scalar_prefetch = 0 : i64, scratch_operands = 0 : i64, tpu.core_type = #tpu.core_type<tc>, window_params = [{transform_indices = @transform_0, window_bounds = array<i64: 2, 1024>}, {pipeline_mode = #tpu.pipeline_mode<synchronous>, transform_indices = @transform_1, window_bounds = array<i64: 1024, 128>}, {pipeline_mode = #tpu.pipeline_mode<synchronous>, transform_indices = @transform_2, window_bounds = array<i64: 8, 128>}, {pipeline_mode = #tpu.pipeline_mode<synchronous>, transform_indices = @transform_3, window_bounds = array<i64: 128, 128>}, {pipeline_mode = #tpu.pipeline_mode<synchronous>, transform_indices = @transform_4, window_bounds = array<i64: 1, 128>}, {transform_indices = @transform_5, window_bounds = array<i64: 2, 128>}]} {
    %c0 = arith.constant 0 : index
    %c0_0 = arith.constant 0 : index
    %0 = vector.load %arg1[%c0, %c0_0] : memref<2x1024xf32, #tpu.memory_space<vmem>>, vector<2x1024xf32>
    %c0_1 = arith.constant 0 : index
    %c0_2 = arith.constant 0 : index
    %1 = vector.load %arg3[%c0_1, %c0_2] : memref<8x128xf32, #tpu.memory_space<vmem>>, vector<8x128xf32>
    %2 = vector.extract_strided_slice %1 {offsets = [0, 0], sizes = [1, 128], strides = [1, 1]} : vector<8x128xf32> to vector<1x128xf32>
    %3 = vector.extract_strided_slice %1 {offsets = [1, 0], sizes = [1, 128], strides = [1, 1]} : vector<8x128xf32> to vector<1x128xf32>
    %4 = vector.extract_strided_slice %1 {offsets = [2, 0], sizes = [1, 128], strides = [1, 1]} : vector<8x128xf32> to vector<1x128xf32>
    %5 = arith.mulf %0, %0 : vector<2x1024xf32>
    %cst = arith.constant dense<0.000000e+00> : vector<2xf32>
    %6 = vector.multi_reduction <add>, %5, %cst [1] : vector<2x1024xf32> to vector<2xf32>
    %7 = vector.shape_cast %6 : vector<2xf32> to vector<2x1xf32>
    %c0_3 = arith.constant 0 : index
    %c0_4 = arith.constant 0 : index
    %8 = vector.load %arg2[%c0_3, %c0_4] : memref<1024x128xf32, #tpu.memory_space<vmem>>, vector<1024x128xf32>
    %cst_5 = arith.constant dense<0.000000e+00> : vector<2x128xf32>
    %9 = tpu.matmul %0, %8, %cst_5 {dimension_numbers = #tpu.dot_dimension_numbers<[1], [0], [0], [1], [0, 0, 1, 1], [], []>} : vector<2x1024xf32>, vector<1024x128xf32>, vector<2x128xf32> -> vector<2x128xf32>
    %10 = vector.broadcast %7 : vector<2x1xf32> to vector<2x128xf32>
    %11 = vector.broadcast %2 : vector<1x128xf32> to vector<2x128xf32>
    %12 = arith.addf %10, %11 : vector<2x128xf32>
    %13 = arith.addf %12, %9 : vector<2x128xf32>
    %cst_6 = arith.constant 0.000000e+00 : f32
    %14 = vector.broadcast %cst_6 : f32 to vector<2x128xf32>
    %15 = arith.maximumf %13, %14 : vector<2x128xf32>
    %16 = math.sqrt %15 : vector<2x128xf32>
    %17 = vector.broadcast %3 : vector<1x128xf32> to vector<2x128xf32>
    %18 = arith.mulf %17, %16 : vector<2x128xf32>
    %19 = vector.broadcast %4 : vector<1x128xf32> to vector<2x128xf32>
    %20 = arith.subf %19, %18 : vector<2x128xf32>
    %21 = math.exp %20 : vector<2x128xf32>
    %cst_7 = arith.constant dense<0.000000e+00> : vector<2xf32>
    %22 = vector.multi_reduction <add>, %21, %cst_7 [1] : vector<2x128xf32> to vector<2xf32>
    %23 = vector.shape_cast %22 : vector<2xf32> to vector<2x1xf32>
    %c0_8 = arith.constant 0 : index
    %c0_9 = arith.constant 0 : index
    %24 = vector.load %arg4[%c0_8, %c0_9] : memref<128x128xf32, #tpu.memory_space<vmem>>, vector<128x128xf32>
    %cst_10 = arith.constant dense<0.000000e+00> : vector<2x128xf32>
    %25 = tpu.matmul %21, %24, %cst_10 {dimension_numbers = #tpu.dot_dimension_numbers<[1], [0], [0], [1], [0, 0, 1, 1], [], []>} : vector<2x128xf32>, vector<128x128xf32>, vector<2x128xf32> -> vector<2x128xf32>
    %26 = tpu.reciprocal %23 : vector<2x1xf32> -> vector<2x1xf32>
    %27 = vector.broadcast %26 : vector<2x1xf32> to vector<2x128xf32>
    %28 = arith.mulf %25, %27 : vector<2x128xf32>
    %c0_11 = arith.constant 0 : index
    %c0_12 = arith.constant 0 : index
    %29 = vector.load %arg5[%c0_11, %c0_12] : memref<1x128xf32, #tpu.memory_space<vmem>>, vector<1x128xf32>
    %30 = vector.broadcast %29 : vector<1x128xf32> to vector<2x128xf32>
    %31 = arith.addf %28, %30 : vector<2x128xf32>
    %c0_13 = arith.constant 0 : index
    %c0_14 = arith.constant 0 : index
    %32 = vector.load %arg6[%c0_13, %c0_14] : memref<2x128xf32, #tpu.memory_space<vmem>>, vector<2x128xf32>
    tpu.vector_store %arg6[%c0_13, %c0_14], %31 {strides = array<i32>} : memref<2x128xf32, #tpu.memory_space<vmem>>, vector<2x128xf32>,
    return
  }
  func.func @transform_0(%arg0: i32) -> (i32, i32) {
    %c0_i32 = arith.constant 0 : i32
    %c0_i32_0 = arith.constant 0 : i32
    return %arg0, %c0_i32 : i32, i32
  }
  func.func @transform_1(%arg0: i32) -> (i32, i32) {
    %c0_i32 = arith.constant 0 : i32
    %c0_i32_0 = arith.constant 0 : i32
    %c0_i32_1 = arith.constant 0 : i32
    return %c0_i32, %c0_i32_0 : i32, i32
  }
  func.func @transform_2(%arg0: i32) -> (i32, i32) {
    %c0_i32 = arith.constant 0 : i32
    %c0_i32_0 = arith.constant 0 : i32
    %c0_i32_1 = arith.constant 0 : i32
    return %c0_i32, %c0_i32_0 : i32, i32
  }
  func.func @transform_3(%arg0: i32) -> (i32, i32) {
    %c0_i32 = arith.constant 0 : i32
    %c0_i32_0 = arith.constant 0 : i32
    %c0_i32_1 = arith.constant 0 : i32
    return %c0_i32, %c0_i32_0 : i32, i32
  }
  func.func @transform_4(%arg0: i32) -> (i32, i32) {
    %c0_i32 = arith.constant 0 : i32
    %c0_i32_0 = arith.constant 0 : i32
    %c0_i32_1 = arith.constant 0 : i32
    return %c0_i32, %c0_i32_0 : i32, i32
  }
  func.func @transform_5(%arg0: i32) -> (i32, i32) {
    %c0_i32 = arith.constant 0 : i32
    %c0_i32_0 = arith.constant 0 : i32
    return %arg0, %c0_i32 : i32, i32
  }
}

</mosaic_0001>

<bundles_post_ra>
// kernel: _lambda_.1
= control target key start
LH: loop header
LB: loop body
LE: loop exit
PB: predicated region body
PF: predicated region fallthrough
CT: control target
= control target key end

     0   :  { %10 = vsyncpa [#allocation3], 0  ;;  %s1082_s0 = inlined_call_operand.vmem [shape: f32[2,1024], index: 0, kind: input, shape index: {}]   ;;  %s1083_s1 = inlined_call_operand.hbm [shape: f32[1024,128], index: 1, kind: input, shape index: {}]   ;;  %s1084_s2 = inlined_call_operand.vmem [shape: f32[8,128], index: 2, kind: input, shape index: {}]   ;;  %s1085_s3 = inlined_call_operand.vmem [shape: f32[128,128], index: 3, kind: input, shape index: {}]   ;;  %s1086_s4 = inlined_call_operand.vmem [shape: f32[1,128], index: 4, kind: input, shape index: {}]   ;;  %s1087_s5 = inlined_call_operand.hbm [shape: f32[2,128], index: 5, kind: output, shape index: {}]  }
   0x1   :  { %11 = vsyncpa [#allocation4], 0  ;;  %s947_s18 = smov [#allocation2]  }
   0x2   :  { %s19_s19 = sshll.u32 %s947_s18, 4  ;;  %s20_s19 = int_to_ptr.vmem [resolvable:$true] %s19_s19 }
   0x3   :  { %s911_s20 = scalar_lea.vmem %s20_s19, 16384  ;;  %p916_p1 = scmp.lt.s32.totalorder %s20_s19, %s20_s19 }
   0x4   :  { %p912_p0 = scmp.ne.s32.totalorder %s20_s19, %s911_s20  ;;  %p917_p2 = scmp.lt.s32.totalorder %s911_s20, %s911_s20 }
   0x6   :  { %p918_p3 = por %p917_p2, %p916_p1 }
   0x8   :  { %p919_p4 = pnand %p918_p3, %p912_p0 }
   0xa   :  { %922 = shalt.err (!%p919_p4)
}
   0xb   :  { %s948_s21 = smov 128   ;;  %s949_s22 = smov 8  }
   0xc   :  { %25 = dma.hbm_to_vmem [thread:$0]  %s1083_s1, 16384, %s20_s19, [#allocation3], %s948_s21, %s948_s21, %s949_s22  }
   0xd   :  { %943 = dma.done.wait [#allocation3], 16384  }
   0xe   :  { %944 = vsyncadd [#allocation3], 4294950912  ;;  %v133_v0 = vld [vmem:[#allocation2 + $0xf8] sm:$0xff]  ;;  %v132_v4 = vld [vmem:[#allocation2 + $0xf0] sm:$0xff]  ;;  %v950_v30 = vmov 1983009808   ;;  %v46_v32 = vlaneseq }
   0xf   :  { %v165_v1 = vld [vmem:[#allocation2 + $0x1f8] sm:$0xff]  ;;  %696 = vmatprep.subr.mxu0 %v133_v0  ;;  %v164_v5 = vld [vmem:[#allocation2 + $0x1f0] sm:$0xff]  ;;  %v131_v8 = vld [vmem:[#allocation2 + $0xe8] sm:$0xff]  ;;  %v44_v31 = vunpack.c.l.s4 %v950_v30  ;;  %vm84_vm0 = vcmask 1041408   ;;  %vm952_vm1 = vmmov 0   ;;  %s953_s9 = smov [#allocation5]  }
  0x10   :  { %v117_v2 = vld [vmem:[#allocation2 + $0x78] sm:$0xff]  ;;  %731 = vmatprep.subr.mxu1 %v165_v1  ;;  %v116_v6 = vld [vmem:[#allocation2 + $0x70] sm:$0xff]  ;;  %v163_v9 = vld [vmem:[#allocation2 + $0x1e8] sm:$0xff]  ;;  %v987_v42 = vshrl.u32 %v46_v32, 7  ;;  %s686_s10 = sshll.u32 %s953_s9, 4  ;;  %s687_s10 = int_to_ptr.vmem [resolvable:$true] %s686_s10 }
  0x11   :  { %v149_v3 = vld [vmem:[#allocation2 + $0x178] sm:$0xff]  ;;  %697 = vmatpush3.msra.mxu0 %v117_v2  ;;  %v148_v7 = vld [vmem:[#allocation2 + $0x170] sm:$0xff]  ;;  %v115_v10 = vld [vmem:[#allocation2 + $0x68] sm:$0xff]  ;;  %v45_v41 = vunpack.c.0.s8 %v44_v31  ;;  %s923_s11 = scalar_lea.vmem %s687_s10, 32  ;;  %p928_p6 = scmp.lt.s32.totalorder %s687_s10, %s687_s10 }
  0x12   :  { %732 = vmatpush3.msra.mxu1 %v149_v3  ;;  %698 = vmatprep.subr.mxu0 %v132_v4  ;;  %v147_v11 = vld [vmem:[#allocation2 + $0x168] sm:$0xff]  ;;  %v130_v12 = vld [vmem:[#allocation2 + $0xe0] sm:$0xff]  ;;  %v129_v16 = vld [vmem:[#allocation2 + $0xd8] sm:$0xff]  ;;  %p924_p5 = scmp.ne.s32.totalorder %s687_s10, %s923_s11  ;;  %p929_p7 = scmp.lt.s32.totalorder %s923_s11, %s923_s11 }
  0x13   :  { %733 = vmatprep.subr.mxu1 %v164_v5  ;;  %699 = vmatpush3.msra.mxu0 %v116_v6  ;;  %v162_v13 = vld [vmem:[#allocation2 + $0x1e0] sm:$0xff]  ;;  %v161_v17 = vld [vmem:[#allocation2 + $0x1d8] sm:$0xff]  ;;  %v128_v20 = vld [vmem:[#allocation2 + $0xd0] sm:$0xff]  ;;  %v990_v51 = vsub.s32 %v45_v41, %v987_v42 }
  0x14   :  { %734 = vmatpush3.msra.mxu1 %v148_v7  ;;  %700 = vmatprep.subr.mxu0 %v131_v8  ;;  %v114_v14 = vld [vmem:[#allocation2 + $0x60] sm:$0xff]  ;;  %v113_v18 = vld [vmem:[#allocation2 + $0x58] sm:$0xff]  ;;  %v160_v21 = vld [vmem:[#allocation2 + $0x1d0] sm:$0xff]  ;;  %p930_p8 = por %p929_p7, %p928_p6 }
  0x15   :  { %735 = vmatprep.subr.mxu1 %v163_v9  ;;  %v146_v15 = vld [vmem:[#allocation2 + $0x160] sm:$0xff]  ;;  %701 = vmatpush3.msra.mxu0 %v115_v10  ;;  %v145_v19 = vld [vmem:[#allocation2 + $0x158] sm:$0xff]  ;;  %v112_v22 = vld [vmem:[#allocation2 + $0x50] sm:$0xff] }
  0x16   :  { %736 = vmatpush3.msra.mxu1 %v147_v11  ;;  %702 = vmatprep.subr.mxu0 %v130_v12  ;;  %v144_v23 = vld [vmem:[#allocation2 + $0x150] sm:$0xff]  ;;  %v127_v24 = vld [vmem:[#allocation2 + $0xc8] sm:$0xff]  ;;  %v126_v28 = vld [vmem:[#allocation2 + $0xc0] sm:$0xff]  ;;  %p931_p9 = pnand %p930_p8, %p924_p5 }
  0x17   :  { %737 = vmatprep.subr.mxu1 %v162_v13  ;;  %703 = vmatpush3.msra.mxu0 %v114_v14  ;;  %v159_v25 = vld [vmem:[#allocation2 + $0x1c8] sm:$0xff]  ;;  %v158_v29 = vld [vmem:[#allocation2 + $0x1c0] sm:$0xff]  ;;  %v125_v35 = vld [vmem:[#allocation2 + $0xb8] sm:$0xff] }
  0x18   :  { %738 = vmatpush3.msra.mxu1 %v146_v15  ;;  %704 = vmatprep.subr.mxu0 %v129_v16  ;;  %v111_v26 = vld [vmem:[#allocation2 + $0x48] sm:$0xff]  ;;  %v110_v33 = vld [vmem:[#allocation2 + $0x40] sm:$0xff]  ;;  %v157_v36 = vld [vmem:[#allocation2 + $0x1b8] sm:$0xff] }
  0x19   :  { %739 = vmatprep.subr.mxu1 %v161_v17  ;;  %705 = vmatpush3.msra.mxu0 %v113_v18  ;;  %v143_v27 = vld [vmem:[#allocation2 + $0x148] sm:$0xff]  ;;  %v142_v34 = vld [vmem:[#allocation2 + $0x140] sm:$0xff]  ;;  %v109_v37 = vld [vmem:[#allocation2 + $0x38] sm:$0xff] }
  0x1a   :  { %740 = vmatpush3.msra.mxu1 %v145_v19  ;;  %706 = vmatprep.subr.mxu0 %v128_v20  ;;  %v141_v38 = vld [vmem:[#allocation2 + $0x138] sm:$0xff]  ;;  %v124_v39 = vld [vmem:[#allocation2 + $0xb0] sm:$0xff]  ;;  %v123_v45 = vld [vmem:[#allocation2 + $0xa8] sm:$0xff] }
  0x1b   :  { %741 = vmatprep.subr.mxu1 %v160_v21  ;;  %707 = vmatpush3.msra.mxu0 %v112_v22  ;;  %v156_v40 = vld [vmem:[#allocation2 + $0x1b0] sm:$0xff]  ;;  %v155_v46 = vld [vmem:[#allocation2 + $0x1a8] sm:$0xff]  ;;  %v122_v49 = vld [vmem:[#allocation2 + $0xa0] sm:$0xff] }
  0x1c   :  { %742 = vmatpush3.msra.mxu1 %v144_v23  ;;  %708 = vmatprep.subr.mxu0 %v127_v24  ;;  %v108_v43 = vld [vmem:[#allocation2 + $0x30] sm:$0xff]  ;;  %v107_v47 = vld [vmem:[#allocation2 + $0x28] sm:$0xff]  ;;  %v154_v50 = vld [vmem:[#allocation2 + $0x1a0] sm:$0xff] }
  0x1d   :  { %743 = vmatprep.subr.mxu1 %v159_v25  ;;  %709 = vmatpush3.msra.mxu0 %v111_v26  ;;  %v140_v44 = vld [vmem:[#allocation2 + $0x130] sm:$0xff]  ;;  %v139_v48 = vld [vmem:[#allocation2 + $0x128] sm:$0xff]  ;;  %v106_v52 = vld [vmem:[#allocation2 + $0x20] sm:$0xff] }
  0x1e   :  { %744 = vmatpush3.msra.mxu1 %v143_v27  ;;  %710 = vmatprep.subr.mxu0 %v126_v28  ;;  %v138_v53 = vld [vmem:[#allocation2 + $0x120] sm:$0xff]  ;;  %v121_v55 = vld [vmem:[#allocation2 + $0x98] sm:$0xff]  ;;  %v120_v60 = vld [vmem:[#allocation2 + $0x90] sm:$0xff] }
  0x1f   :  { %745 = vmatprep.subr.mxu1 %v158_v29  ;;  %711 = vmatpush3.msra.mxu0 %v110_v33  ;;  %v35_v54 = vld [vmem:[%s1082_s0] sm:$0xff]  ;;  %v153_v56 = vld [vmem:[#allocation2 + $0x198] sm:$0xff]  ;;  %v152_v61 = vld [vmem:[#allocation2 + $0x190] sm:$0xff] }
  0x20   :  { %746 = vmatpush3.msra.mxu1 %v142_v34  ;;  %712 = vmatprep.subr.mxu0 %v125_v35  ;;  %v232_v57 = vcombine.high %v35_v54, %v35_v54  ;;  %v105_v58 = vld [vmem:[#allocation2 + $0x18] sm:$0xff]  ;;  %v239_v62 = vrot.slane %v35_v54, %v990_v51  ;;  %v104_v63 = vld [vmem:[#allocation2 + $0x10] sm:$0xff]  ;;  %v119_v2 = vld [vmem:[#allocation2 + $0x88] sm:$0xff]  ;;  %v38_v4 = vmul.f32 %v35_v54, %v35_v54 }
  0x21   :  { %747 = vmatprep.subr.mxu1 %v157_v36  ;;  %713 = vmatpush3.msra.mxu0 %v109_v37  ;;  %v137_v59 = vld [vmem:[#allocation2 + $0x118] sm:$0xff]  ;;  %v136_v0 = vld [vmem:[#allocation2 + $0x110] sm:$0xff]  ;;  %v151_v3 = vld [vmem:[#allocation2 + $0x188] sm:$0xff] }
  0x22   :  { %748 = vmatpush3.msra.mxu1 %v141_v38  ;;  %714 = vmatprep.subr.mxu0 %v124_v39  ;;  %v246_v1 = vrot.slane %v232_v57, %v990_v51  ;;  %v103_v5 = vld [vmem:[#allocation2 + $0x8] sm:$0xff]  ;;  %v118_v7 = vld [vmem:[#allocation2 + $0x80] sm:$0xff]  ;;  %v247_v9 = vcombine.high %v239_v62, %v239_v62  ;;  %v49_v12 = vrot.slane %v38_v4, %v990_v51  ;;  %v197_v14 = vld [vmem:[#allocation2 + $0x2f8] sm:$0xff] }
  0x23   :  { %749 = vmatprep.subr.mxu1 %v156_v40  ;;  %715 = vmatpush3.msra.mxu0 %v108_v43  ;;  %v135_v6 = vld [vmem:[#allocation2 + $0x108] sm:$0xff]  ;;  %v150_v8 = vld [vmem:[#allocation2 + $0x180] sm:$0xff]  ;;  %v229_v15 = vld [vmem:[#allocation2 + $0x3f8] sm:$0xff]  ;;  %v42_v18 = vcombine.high %v38_v4, %v38_v4 }
  0x24   :  { %750 = vmatpush3.msra.mxu1 %v140_v44  ;;  %716 = vmatprep.subr.mxu0 %v123_v45  ;;  %v102_v10 = vld [vmem:[#allocation2] sm:$0xff]  ;;  %v248_v11 = vcombine.high %v246_v1, %v246_v1  ;;  %v181_v16 = vld [vmem:[#allocation2 + $0x278] sm:$0xff]  ;;  %v57_v19 = vcombine.high %v49_v12, %v49_v12  ;;  %v196_v20 = vld [vmem:[#allocation2 + $0x2f0] sm:$0xff]  ;;  %v85_v29 = vsel %vm84_vm0, %v49_v12, 0.0 }
  0x25   :  { %751 = vmatprep.subr.mxu1 %v155_v46  ;;  %717 = vmatpush3.msra.mxu0 %v107_v47  ;;  %v134_v13 = vld [vmem:[#allocation2 + $0x100] sm:$0xff]  ;;  %v213_v17 = vld [vmem:[#allocation2 + $0x378] sm:$0xff]  ;;  %v228_v21 = vld [vmem:[#allocation2 + $0x3f0] sm:$0xff]  ;;  %v56_v28 = vrot.slane %v42_v18, %v990_v51 }
  0x26   :  { %752 = vmatpush3.msra.mxu1 %v139_v48  ;;  %718 = vmatprep.subr.mxu0 %v122_v49  ;;  %v180_v22 = vld [vmem:[#allocation2 + $0x270] sm:$0xff]  ;;  %v195_v24 = vld [vmem:[#allocation2 + $0x2e8] sm:$0xff]  ;;  %v86_v30 = vsel %vm84_vm0, %v57_v19, 0.0  ;;  %v194_v31 = vld [vmem:[#allocation2 + $0x2e0] sm:$0xff] }
  0x27   :  { %753 = vmatprep.subr.mxu1 %v154_v50  ;;  %719 = vmatpush3.msra.mxu0 %v106_v52  ;;  %v212_v23 = vld [vmem:[#allocation2 + $0x370] sm:$0xff]  ;;  %v227_v25 = vld [vmem:[#allocation2 + $0x3e8] sm:$0xff]  ;;  %v226_v32 = vld [vmem:[#allocation2 + $0x3e0] sm:$0xff]  ;;  %v87_v37 = vadd.f32 %v86_v30, %v85_v29  ;;  %v58_v44 = vcombine.high %v56_v28, %v56_v28  ;;  %v88_v45 = vsel %vm84_vm0, %v56_v28, 0.0 }
  0x28   :  { %754 = vmatpush3.msra.mxu1 %v138_v53  ;;  %720 = vmatprep.subr.mxu0 %v121_v55  ;;  %v179_v26 = vld [vmem:[#allocation2 + $0x268] sm:$0xff]  ;;  %v178_v33 = vld [vmem:[#allocation2 + $0x260] sm:$0xff]  ;;  %v193_v35 = vld [vmem:[#allocation2 + $0x2d8] sm:$0xff] }
  0x29   :  { %755 = vmatprep.subr.mxu1 %v153_v56  ;;  %721 = vmatpush3.msra.mxu0 %v105_v58  ;;  %v211_v27 = vld [vmem:[#allocation2 + $0x368] sm:$0xff]  ;;  %v210_v34 = vld [vmem:[#allocation2 + $0x360] sm:$0xff]  ;;  %v225_v36 = vld [vmem:[#allocation2 + $0x3d8] sm:$0xff]  ;;  %v89_v54 = vadd.f32 %v88_v45, %v87_v37  ;;  %v90_v58 = vsel %vm84_vm0, %v58_v44, 0.0 }
  0x2a   :  { %756 = vmatpush3.msra.mxu1 %v137_v59  ;;  %722 = vmatprep.subr.mxu0 %v120_v60  ;;  %v177_v38 = vld [vmem:[#allocation2 + $0x258] sm:$0xff]  ;;  %v192_v40 = vld [vmem:[#allocation2 + $0x2d0] sm:$0xff]  ;;  %v1004_v43 = vld [vmem:[%s1082_s0 + $0x8] sm:$0xff] }
  0x2b   :  { %757 = vmatprep.subr.mxu1 %v152_v61  ;;  %723 = vmatpush3.msra.mxu0 %v104_v63  ;;  %v209_v39 = vld [vmem:[#allocation2 + $0x358] sm:$0xff]  ;;  %v224_v41 = vld [vmem:[#allocation2 + $0x3d0] sm:$0xff]  ;;  %v39_v48 = vmul.f32 %v1004_v43, %v1004_v43  ;;  %v191_v49 = vld [vmem:[#allocation2 + $0x2c8] sm:$0xff]  ;;  %v256_v28 = vrot.slane %v1004_v43, %v990_v51 }
  0x2c   :  { %758 = vmatpush3.msra.mxu1 %v136_v0  ;;  %724 = vmatprep.subr.mxu0 %v119_v2  ;;  %v176_v46 = vld [vmem:[#allocation2 + $0x250] sm:$0xff]  ;;  %v223_v50 = vld [vmem:[#allocation2 + $0x3c8] sm:$0xff]  ;;  %v190_v55 = vld [vmem:[#allocation2 + $0x2c0] sm:$0xff] }
  0x2d   :  { %759 = vmatprep.subr.mxu1 %v151_v3  ;;  %725 = vmatpush3.msra.mxu0 %v103_v5  ;;  %v208_v47 = vld [vmem:[#allocation2 + $0x350] sm:$0xff]  ;;  %v175_v52 = vld [vmem:[#allocation2 + $0x248] sm:$0xff]  ;;  %v222_v56 = vld [vmem:[#allocation2 + $0x3c0] sm:$0xff]  ;;  %v66_v57 = vrot.slane %v39_v48, %v990_v51  ;;  %v59_v4 = vcombine.high %v39_v48, %v39_v48 }
  0x2e   :  { %760 = vmatpush3.msra.mxu1 %v135_v6  ;;  %726 = vmatprep.subr.mxu0 %v118_v7  ;;  %v207_v53 = vld [vmem:[#allocation2 + $0x348] sm:$0xff]  ;;  %v174_v59 = vld [vmem:[#allocation2 + $0x240] sm:$0xff]  ;;  %v189_v61 = vld [vmem:[#allocation2 + $0x2b8] sm:$0xff] }
  0x2f   :  { %761 = vmatprep.subr.mxu1 %v150_v8  ;;  %727 = vmatpush3.msra.mxu0 %v102_v10  ;;  %v206_v60 = vld [vmem:[#allocation2 + $0x340] sm:$0xff]  ;;  %v173_v63 = vld [vmem:[#allocation2 + $0x238] sm:$0xff]  ;;  %v188_v2 = vld [vmem:[#allocation2 + $0x2b0] sm:$0xff]  ;;  %v74_v5 = vcombine.high %v66_v57, %v66_v57  ;;  %v92_v6 = vsel %vm84_vm0, %v66_v57, 0.0 }
  0x30   :  { %338 = vmatprep.mubr.f32.mxu0 %v247_v9  ;;  %762 = vmatpush3.msra.mxu1 %v134_v13  ;;  %v205_v0 = vld [vmem:[#allocation2 + $0x338] sm:$0xff]  ;;  %v220_v3 = vld [vmem:[#allocation2 + $0x3b0] sm:$0xff]  ;;  %v187_v9 = vld [vmem:[#allocation2 + $0x2a8] sm:$0xff] }
  0x31   :  { %408 = vmatprep.mubr.f32.mxu1 %v248_v11  ;;  %339 = vmatmul.mubr.f32.vlgmr.msra.gmra.mxu0 %v239_v62  ;;  %v221_v62 = vld [vmem:[#allocation2 + $0x3b8] sm:$0xff]  ;;  %v172_v7 = vld [vmem:[#allocation2 + $0x230] sm:$0xff]  ;;  %v219_v10 = vld [vmem:[#allocation2 + $0x3a8] sm:$0xff] }
  0x32   :  { %409 = vmatmul.mubr.f32.vlgmr.msra.gmra.mxu1 %v246_v1  ;;  %766 = vmatprep.subr.mxu0 %v197_v14  ;;  %v91_v1 = vadd.f32 %v90_v58, %v89_v54  ;;  %v204_v8 = vld [vmem:[#allocation2 + $0x330] sm:$0xff]  ;;  %v171_v11 = vld [vmem:[#allocation2 + $0x228] sm:$0xff]  ;;  %v186_v14 = vld [vmem:[#allocation2 + $0x2a0] sm:$0xff] }
  0x33   :  { %801 = vmatprep.subr.mxu1 %v229_v15  ;;  %767 = vmatpush3.msra.mxu0 %v181_v16  ;;  %v203_v12 = vld [vmem:[#allocation2 + $0x328] sm:$0xff]  ;;  %v218_v15 = vld [vmem:[#allocation2 + $0x3a0] sm:$0xff]  ;;  %v73_v16 = vrot.slane %v59_v4, %v990_v51  ;;  %v598_v48 = vld [vmem:[%s1085_s3 + $0x78] sm:$0xff] }
  0x34   :  { %802 = vmatpush3.msra.mxu1 %v213_v17  ;;  %768 = vmatprep.subr.mxu0 %v196_v20  ;;  %v93_v13 = vadd.f32 %v92_v6, %v91_v1  ;;  %v94_v17 = vsel %vm84_vm0, %v74_v5, 0.0  ;;  %v170_v18 = vld [vmem:[#allocation2 + $0x220] sm:$0xff]  ;;  %v249_v20 = vcombine.high %v1004_v43, %v1004_v43  ;;  %v199_v37 = vld [vmem:[#allocation2 + $0x308] sm:$0xff]  ;;  %v593_v54 = vld [vmem:[%s1085_s3 + $0x50] sm:$0xff]  ;;  %v556_v5 = vsub.s32 0, %v987_v42 }
  0x35   :  { %803 = vmatprep.subr.mxu1 %v228_v21  ;;  %769 = vmatpush3.msra.mxu0 %v180_v22  ;;  %v202_v19 = vld [vmem:[#allocation2 + $0x320] sm:$0xff]  ;;  %v185_v21 = vld [vmem:[#allocation2 + $0x298] sm:$0xff]  ;;  %v75_v29 = vcombine.high %v73_v16, %v73_v16  ;;  %v96_v30 = vsel %vm84_vm0, %v73_v16, 0.0  ;;  %v589_v58 = vld [vmem:[%s1085_s3 + $0x30] sm:$0xff] }
  0x36   :  { %804 = vmatpush3.msra.mxu1 %v212_v23  ;;  %770 = vmatprep.subr.mxu0 %v195_v24  ;;  %v217_v22 = vld [vmem:[#allocation2 + $0x398] sm:$0xff]  ;;  %v166_v44 = vld [vmem:[#allocation2 + $0x200] sm:$0xff] }
  0x37   :  { %805 = vmatprep.subr.mxu1 %v227_v25  ;;  %771 = vmatpush3.msra.mxu0 %v179_v26  ;;  %v169_v23 = vld [vmem:[#allocation2 + $0x218] sm:$0xff]  ;;  %v95_v25 = vadd.f32 %v94_v17, %v93_v13  ;;  %v184_v26 = vld [vmem:[#allocation2 + $0x290] sm:$0xff]  ;;  %v98_v43 = vsel %vm84_vm0, %v75_v29, 0.0  ;;  %v198_v45 = vld [vmem:[#allocation2 + $0x300] sm:$0xff] }
  0x38   :  { %806 = vmatpush3.msra.mxu1 %v211_v27  ;;  %772 = vmatprep.subr.mxu0 %v194_v31  ;;  %v201_v24 = vld [vmem:[#allocation2 + $0x318] sm:$0xff]  ;;  %v216_v27 = vld [vmem:[#allocation2 + $0x390] sm:$0xff]  ;;  %v37_v6 = vld [vmem:[%s1084_s2] sm:$0xff] }
  0x39   :  { %807 = vmatprep.subr.mxu1 %v226_v32  ;;  %773 = vmatpush3.msra.mxu0 %v178_v33  ;;  %v168_v31 = vld [vmem:[#allocation2 + $0x210] sm:$0xff]  ;;  %v263_v33 = vrot.slane %v249_v20, %v990_v51  ;;  %v590_v57 = vld [vmem:[%s1085_s3 + $0x38] sm:$0xff] }
  0x3a   :  { %808 = vmatpush3.msra.mxu1 %v210_v34  ;;  %774 = vmatprep.subr.mxu0 %v193_v35  ;;  %v200_v32 = vld [vmem:[#allocation2 + $0x310] sm:$0xff]  ;;  %v183_v34 = vld [vmem:[#allocation2 + $0x288] sm:$0xff] }
  0x3b   :  { %809 = vmatprep.subr.mxu1 %v225_v36  ;;  %775 = vmatpush3.msra.mxu0 %v177_v38  ;;  %v215_v35 = vld [vmem:[#allocation2 + $0x388] sm:$0xff]  ;;  %v97_v38 = vadd.f32 %v96_v30, %v95_v25  ;;  %v265_v51 = vcombine.high %v263_v33, %v263_v33 }
  0x3c   :  { %810 = vmatpush3.msra.mxu1 %v209_v39  ;;  %776 = vmatprep.subr.mxu0 %v192_v40  ;;  %v167_v36 = vld [vmem:[#allocation2 + $0x208] sm:$0xff]  ;;  %v182_v39 = vld [vmem:[#allocation2 + $0x280] sm:$0xff] }
  0x3d   :  { %811 = vmatprep.subr.mxu1 %v224_v41  ;;  %777 = vmatpush3.msra.mxu0 %v176_v46  ;;  %v214_v40 = vld [vmem:[#allocation2 + $0x380] sm:$0xff]  ;;  %v264_v41 = vcombine.high %v256_v28, %v256_v28  ;;  %v99_v46 = vadd.f32 %v98_v43, %v97_v38 }
  0x3e   :  { %812 = vmatpush3.msra.mxu1 %v208_v47  ;;  %778 = vmatprep.subr.mxu0 %v191_v49  ;;  %v951_v47 = vmov 0.0   ;;  %v597_v49 = vld [vmem:[%s1085_s3 + $0x70] sm:$0xff] }
  0x3f   :  { %813 = vmatprep.subr.mxu1 %v223_v50  ;;  %779 = vmatpush3.msra.mxu0 %v175_v52  ;;  %v596_v50 = vld [vmem:[%s1085_s3 + $0x68] sm:$0xff]  ;;  %v595_v52 = vld [vmem:[%s1085_s3 + $0x60] sm:$0xff] }
  0x40   :  { %814 = vmatpush3.msra.mxu1 %v207_v53  ;;  %780 = vmatprep.subr.mxu0 %v190_v55  ;;  %v594_v53 = vld [vmem:[%s1085_s3 + $0x58] sm:$0xff]  ;;  %v592_v55 = vld [vmem:[%s1085_s3 + $0x48] sm:$0xff] }
  0x41   :  { %815 = vmatprep.subr.mxu1 %v222_v56  ;;  %781 = vmatpush3.msra.mxu0 %v174_v59  ;;  %v591_v56 = vld [vmem:[%s1085_s3 + $0x40] sm:$0xff]  ;;  %v588_v59 = vld [vmem:[%s1085_s3 + $0x28] sm:$0xff] }
  0x42   :  { %816 = vmatpush3.msra.mxu1 %v206_v60  ;;  %782 = vmatprep.subr.mxu0 %v189_v61  ;;  %v587_v60 = vld [vmem:[%s1085_s3 + $0x20] sm:$0xff]  ;;  %v586_v61 = vld [vmem:[%s1085_s3 + $0x18] sm:$0xff] }
  0x43   :  { %817 = vmatprep.subr.mxu1 %v221_v62  ;;  %783 = vmatpush3.msra.mxu0 %v173_v63  ;;  %v585_v62 = vld [vmem:[%s1085_s3 + $0x10] sm:$0xff]  ;;  %v584_v63 = vld [vmem:[%s1085_s3 + $0x8] sm:$0xff] }
  0x44   :  { %818 = vmatpush3.msra.mxu1 %v205_v0  ;;  %784 = vmatprep.subr.mxu0 %v188_v2  ;;  %v583_v0 = vld [vmem:[%s1085_s3] sm:$0xff] }
  0x45   :  { %819 = vmatprep.subr.mxu1 %v220_v3  ;;  %785 = vmatpush3.msra.mxu0 %v172_v7 }
  0x46   :  { %820 = vmatpush3.msra.mxu1 %v204_v8  ;;  %786 = vmatprep.subr.mxu0 %v187_v9 }
  0x47   :  { %821 = vmatprep.subr.mxu1 %v219_v10  ;;  %787 = vmatpush3.msra.mxu0 %v171_v11  ;;  %v557_v11 = vrot.slane %v37_v6, %v556_v5 }
  0x48   :  { %822 = vmatpush3.msra.mxu1 %v203_v12  ;;  %788 = vmatprep.subr.mxu0 %v186_v14 }
  0x49   :  { %823 = vmatprep.subr.mxu1 %v218_v15  ;;  %789 = vmatpush3.msra.mxu0 %v170_v18 }
  0x4a   :  { %824 = vmatpush3.msra.mxu1 %v202_v19  ;;  %790 = vmatprep.subr.mxu0 %v185_v21 }
  0x4b   :  { %825 = vmatprep.subr.mxu1 %v217_v22  ;;  %791 = vmatpush3.msra.mxu0 %v169_v23  ;;  %v570_v23 = vsub.s32 1, %v987_v42 }
  0x4c   :  { %826 = vmatpush3.msra.mxu1 %v201_v24  ;;  %792 = vmatprep.subr.mxu0 %v184_v26  ;;  %v575_v24 = vsub.s32 2, %v987_v42 }
  0x4d   :  { %827 = vmatprep.subr.mxu1 %v216_v27  ;;  %793 = vmatpush3.msra.mxu0 %v168_v31  ;;  %v571_v26 = vrot.slane %v37_v6, %v570_v23 }
  0x4e   :  { %828 = vmatpush3.msra.mxu1 %v200_v32  ;;  %794 = vmatprep.subr.mxu0 %v183_v34  ;;  %v576_v29 = vrot.slane %v37_v6, %v575_v24 }
  0x4f   :  { %829 = vmatprep.subr.mxu1 %v215_v35  ;;  %795 = vmatpush3.msra.mxu0 %v167_v36 }
  0x50   :  { %830 = vmatpush3.msra.mxu1 %v199_v37  ;;  %796 = vmatprep.subr.mxu0 %v182_v39  ;;  %v695_v39 = vld [vmem:[%s1086_s4] ss:$0 sm:$0xff] }
  0x51   :  { %831 = vmatprep.subr.mxu1 %v214_v40  ;;  %797 = vmatpush3.msra.mxu0 %v166_v44 }
  0x52   :  { %478 = vmatprep.mubr.f32.mxu0 %v264_v41  ;;  %832 = vmatpush3.msra.mxu1 %v198_v45 }
  0x53   :  { %548 = vmatprep.mubr.f32.mxu1 %v265_v51  ;;  %479 = vmatmul.mubr.f32.vlgmr.msra.gmra.mxu0 %v256_v28 }
  0x54   :  { %549 = vmatmul.mubr.f32.vlgmr.msra.gmra.mxu1 %v263_v33  ;;  %100 = vadd.xlane.f32.xlu0 %v99_v46 }
  0x55   :  { %853 = vmatprep.subr.mxu0 %v951_v47  ;;  %885 = vmatprep.mubr.msk.f32.mxu0 %vm952_vm1, %v951_v47 }
  0x56   :  { %854 = vmatpush3.msra.mxu0 %v598_v48 }
  0x57   :  { %855 = vmatprep.subr.mxu0 %v951_v47 }
  0x58   :  { %856 = vmatpush3.msra.mxu0 %v597_v49 }
  0x59   :  { %857 = vmatprep.subr.mxu0 %v951_v47 }
  0x5a   :  { %858 = vmatpush3.msra.mxu0 %v596_v50 }
  0x5b   :  { %859 = vmatprep.subr.mxu0 %v951_v47 }
  0x5c   :  { %860 = vmatpush3.msra.mxu0 %v595_v52 }
  0x5d   :  { %861 = vmatprep.subr.mxu0 %v951_v47 }
  0x5e   :  { %862 = vmatpush3.msra.mxu0 %v594_v53 }
  0x5f   :  { %863 = vmatprep.subr.mxu0 %v951_v47 }
  0x60   :  { %864 = vmatpush3.msra.mxu0 %v593_v54 }
  0x61   :  { %865 = vmatprep.subr.mxu0 %v951_v47 }
  0x62   :  { %866 = vmatpush3.msra.mxu0 %v592_v55 }
  0x63   :  { %867 = vmatprep.subr.mxu0 %v951_v47 }
  0x64   :  { %868 = vmatpush3.msra.mxu0 %v591_v56 }
  0x65   :  { %869 = vmatprep.subr.mxu0 %v951_v47 }
  0x66   :  { %870 = vmatpush3.msra.mxu0 %v590_v57 }
  0x67   :  { %871 = vmatprep.subr.mxu0 %v951_v47 }
  0x68   :  { %872 = vmatpush3.msra.mxu0 %v589_v58 }
  0x69   :  { %873 = vmatprep.subr.mxu0 %v951_v47 }
  0x6a   :  { %874 = vmatpush3.msra.mxu0 %v588_v59 }
  0x6b   :  { %875 = vmatprep.subr.mxu0 %v951_v47 }
  0x6c   :  { %876 = vmatpush3.msra.mxu0 %v587_v60 }
  0x6d   :  { %877 = vmatprep.subr.mxu0 %v951_v47 }
  0x6e   :  { %878 = vmatpush3.msra.mxu0 %v586_v61 }
  0x6f   :  { %879 = vmatprep.subr.mxu0 %v951_v47 }
  0x70   :  { %880 = vmatpush3.msra.mxu0 %v585_v62 }
  0x71   :  { %881 = vmatprep.subr.mxu0 %v951_v47 }
  0x72   :  { %882 = vmatpush3.msra.mxu0 %v584_v63 }
  0x73   :  { %883 = vmatprep.subr.mxu0 %v951_v47 }
  0x74   :  { %884 = vmatpush3.msra.mxu0 %v583_v0 }
  0xdd   :  { %v101_v12 = vpop.xlane.xlu0 %100 }
  0xde   :  { %v558_v19 = vadd.f32 %v557_v11, %v101_v12 }
  0xf1   :  { %v728_v1 = vpop.f32.mrf.mxu0 }
  0xf2   :  { %v763_v2 = vpop.f32.mrf.mxu1 }
  0xf3   :  { %v729_v3 = vpop.f32.mrf.mxu0 }
  0xf4   :  { %v764_v4 = vpop.f32.mrf.mxu1  ;;  %v730_v7 = vadd.f32 %v729_v3, %v728_v1 }
  0xf5   :  { %v765_v8 = vadd.f32 %v764_v4, %v763_v2 }
  0xf7   :  { %v411_v15 = vadd.f32 %v765_v8, %v730_v7 }
 0x113   :  { %v798_v9 = vpop.f32.mrf.mxu0 }
 0x114   :  { %v833_v10 = vpop.f32.mrf.mxu1 }
 0x115   :  { %v799_v13 = vpop.f32.mrf.mxu0 }
 0x116   :  { %v834_v14 = vpop.f32.mrf.mxu1  ;;  %v800_v16 = vadd.f32 %v799_v13, %v798_v9 }
 0x117   :  { %v835_v18 = vadd.f32 %v834_v14, %v833_v10 }
 0x118   :  { %v481_v17 = vadd.f32 %v800_v16, %v411_v15 }
 0x11a   :  { %v551_v20 = vadd.f32 %v835_v18, %v481_v17 }
 0x11c   :  { %v559_v21 = vadd.f32 %v558_v19, %v551_v20 }
 0x11e   :  { %v560_v22 = vmax.f32 %v559_v21, 0.0 }
 0x120   :  { %897 = vrsqrt.f32 %v560_v22  ;;  %vm563_vm2 = vcmp.eq.f32.partialorder %v560_v22, inf  ;;  %v566_v28 = vand.u32 2147483648, %v560_v22  ;;  %vm565_vm3 = vcmp.eq.f32.partialorder %v560_v22, 0.0 }
 0x12d   :  { %v898_v25 = vpop.eup %897 }
 0x12e   :  { %v562_v27 = vmul.f32 %v898_v25, %v560_v22 }
 0x130   :  { %v564_v30 = vsel %vm563_vm2, %v560_v22, %v562_v27 }
 0x131   :  { %v567_v31 = vsel %vm565_vm3, %v566_v28, %v564_v30 }
 0x132   :  { %v572_v32 = vmul.f32 %v571_v26, %v567_v31 }
 0x134   :  { %v577_v33 = vsub.f32 %v576_v29, %v572_v32 }
 0x136   :  { %v578_v34 = vmul.f32 1.442695, %v577_v33 }
 0x138   :  { %899 = vpow2.f32 %v578_v34 }
 0x145   :  { %v900_v35 = vpop.eup %899 }
 0x146   :  { %886 = vmatmul.mubr.f32.vlgmr.msra.gmra.mxu0 %v900_v35  ;;  %v580_v36 = vsel %vm84_vm0, %v900_v35, 0.0 }
 0x147   :  { %581 = vadd.xlane.f32.xlu0 %v580_v36 }
 0x1d0   :  { %v582_v37 = vpop.xlane.xlu0 %581 }
 0x1d1   :  { %901 = vrcp.f32 %v582_v37 }
 0x1de   :  { %v902_v42 = vpop.eup %901 }
 0x206   :  { %v665_v38 = vpop.f32.mrf.mxu0 }
 0x207   :  { %v670_v40 = vmul.f32 %v902_v42, %v665_v38 }
 0x208   :  { %v887_v41 = vpop.f32.mrf.mxu0 }
 0x209   :  { %v678_v43 = vadd.f32 %v695_v39, %v670_v40 }
 0x20b   :  { %679 = vst [vmem:[#allocation5] sm:$0x3] %v678_v43 }
 0x20c   :  { %934 = shalt.err (!%p931_p9)
}
 0x20d   :  { %689 = dma.vmem_to_hbm [thread:$0]  %s687_s10, 32, %s1087_s5, [#allocation4]  }
 0x20e   :  { %945 = dma.done.wait [#allocation4], 32  }
 0x20f   :  { %946 = vsyncadd [#allocation4], 4294967264 }
 0x210   :  { %693 = vsyncpa [#allocation3], 1 }
 0x211   :  { %694 = vsyncpa [#allocation4], 1 }

</bundles_post_ra>
